<compile_context>
chip_gen: v7x
topology: tpu7x:2x2x1
jax: 0.10.0
libtpu: 0.0.40
codegen_flags: <defaults>
</compile_context>

<pallas_src>
import functools

import jax
import jax.numpy as jnp
from jax import lax
from jax.experimental import pallas as pl
from jax.experimental.pallas import tpu as pltpu


def _ifs_kernel(num_funcs, burn, T,
                wtab_ref, idx_ref, init_ref,        # inputs
                xout_ref, yout_ref, stats_ref):     # outputs
    """One batch tile: full T-step IFS recurrence in-kernel.

    wtab_ref : (F, 7) f32 SMEM   rows [w00, w01, w10, w11, b0, b1, opacity]
    idx_ref  : (T, R, 128) i32   sampled function index per (t, point)
    init_ref : (2, R, 128) f32   initial points (row0 = x, row1 = y)
    xout_ref : (T, R, 128) f32   x coordinate of every produced point
    yout_ref : (T, R, 128) f32   y coordinate of every produced point
    stats_ref: (1, 4, R, 128)    per-tile [min_x, min_y, max_x, max_y] over t >= burn
    """
    # Hoisted SMEM scalar reads of the per-function affine parameters (once/tile).
    w00 = [wtab_ref[f, 0] for f in range(num_funcs)]
    w01 = [wtab_ref[f, 1] for f in range(num_funcs)]
    w10 = [wtab_ref[f, 2] for f in range(num_funcs)]
    w11 = [wtab_ref[f, 3] for f in range(num_funcs)]
    b0 = [wtab_ref[f, 4] for f in range(num_funcs)]
    b1 = [wtab_ref[f, 5] for f in range(num_funcs)]

    x0 = init_ref[0]                       # (R, 128)
    y0 = init_ref[1]

    def make_step(track_minmax):
        def step(t, carry):
            x, y, mnx, mny, mxx, mxy = carry
            idx_t = idx_ref[t]             # (R, 128) int32, dynamic load

            # Per-point gather of the selected function's coefficients via masked
            # accumulation over the (small, static) function set.
            w00v = jnp.zeros_like(x)
            w01v = jnp.zeros_like(x)
            w10v = jnp.zeros_like(x)
            w11v = jnp.zeros_like(x)
            b0v = jnp.zeros_like(x)
            b1v = jnp.zeros_like(x)
            for f in range(num_funcs):     # static unroll
                m = (idx_t == f).astype(jnp.float32)
                w00v = w00v + m * w00[f]
                w01v = w01v + m * w01[f]
                w10v = w10v + m * w10[f]
                w11v = w11v + m * w11[f]
                b0v = b0v + m * b0[f]
                b1v = b1v + m * b1[f]

            nx = w00v * x + w01v * y + b0v
            ny = w10v * x + w11v * y + b1v

            # Dense (8,128)-aligned slice stores straight into the output slabs.
            xout_ref[pl.ds(t, 1)] = nx[None]
            yout_ref[pl.ds(t, 1)] = ny[None]

            if track_minmax:
                mnx = jnp.minimum(mnx, nx)
                mny = jnp.minimum(mny, ny)
                mxx = jnp.maximum(mxx, nx)
                mxy = jnp.maximum(mxy, ny)
            return nx, ny, mnx, mny, mxx, mxy
        return step

    pinf = jnp.full_like(x0, jnp.inf)
    ninf = jnp.full_like(x0, -jnp.inf)
    carry = (x0, y0, pinf, pinf, ninf, ninf)

    # Burn-in iterations: no min/max bookkeeping; kept iterations: track min/max
    # in registers.  (If T <= burn there are no kept points — degenerate case.)
    n_burn = min(burn, T)
    carry = lax.fori_loop(0, n_burn, make_step(False), carry)
    carry = lax.fori_loop(n_burn, T, make_step(True), carry)
    _, _, mnx, mny, mxx, mxy = carry

    # Single once-per-tile writeback of the partial min/max; the final (tiny)
    # cross-tile/lane reduce happens in the wrapper.
    stats_ref[...] = jnp.stack([mnx, mny, mxx, mxy], axis=0)[None]


def parallel_ifs_pallas(wtab, idx, init_pts, *, num_funcs, burn, btile=1024):
    """wtab: (F, 7) f32 [w00,w01,w10,w11,b0,b1,opacity]  (SMEM scalar table)
       idx:  (T, B) int32 sampled function indices
       init_pts: (2, B) float32 initial points (row0 = x, row1 = y)
       returns xs (T, B), ys (T, B), per-axis min (2,), per-axis max (2,)."""
    T, B = idx.shape
    assert B % 128 == 0, "batch must be a multiple of the 128-lane width"
    btile = min(btile, B)
    assert B % btile == 0 and btile % 128 == 0
    rows = B // 128
    r_tile = btile // 128
    # block's second-to-last dim must be a multiple of 8 sublanes (or the full dim)
    assert r_tile % 8 == 0 or r_tile == rows
    nb = B // btile

    idx_r = idx.reshape(T, rows, 128)
    init_r = init_pts.reshape(2, rows, 128)

    kernel = functools.partial(_ifs_kernel, num_funcs, burn, T)

    out_shape = (
        jax.ShapeDtypeStruct((T, rows, 128), jnp.float32),        # x
        jax.ShapeDtypeStruct((T, rows, 128), jnp.float32),        # y
        jax.ShapeDtypeStruct((nb, 4, r_tile, 128), jnp.float32),  # per-tile stats
    )
    grid_spec = pltpu.PrefetchScalarGridSpec(
        num_scalar_prefetch=0,
        grid=(nb,),
        in_specs=[
            pl.BlockSpec(memory_space=pltpu.MemorySpace.SMEM),          # wtab (F, 7)
            pl.BlockSpec((T, r_tile, 128), lambda b: (0, b, 0)),        # idx
            pl.BlockSpec((2, r_tile, 128), lambda b: (0, b, 0)),        # init points
        ],
        out_specs=[
            pl.BlockSpec((T, r_tile, 128), lambda b: (0, b, 0)),        # x
            pl.BlockSpec((T, r_tile, 128), lambda b: (0, b, 0)),        # y
            pl.BlockSpec((1, 4, r_tile, 128), lambda b: (b, 0, 0, 0)),  # stats
        ],
    )
    xs, ys, stats = pl.pallas_call(
        kernel,
        out_shape=out_shape,
        grid_spec=grid_spec,
        compiler_params=pltpu.CompilerParams(
            # Batch tiles are fully independent -> shard across TCs on v7x megacore.
            dimension_semantics=("parallel",)),
    )(wtab, idx_r, init_r)

    mn = jnp.min(stats[:, 0:2], axis=(0, 2, 3))   # (2,) = (min_x, min_y)
    mx = jnp.max(stats[:, 2:4], axis=(0, 2, 3))   # (2,) = (max_x, max_y)
    return xs.reshape(T, B), ys.reshape(T, B), mn, mx


def model_infer_forward(wtab, probs, init_pts, key, *, num_points, burn, lf=False):
    """Reproduces ModelInfer.forward (first call: last_points is None)."""
    B = init_pts.shape[1]
    T = num_points
    # TODO(synk): sample_functions() is not provided in the source; implemented as
    # i.i.d. categorical sampling of function indices from optimized_probs().
    idx = jax.random.categorical(key, jnp.log(probs), shape=(T, B)).astype(jnp.int32)

    xs, ys, mn, mx = parallel_ifs_pallas(
        wtab, idx, init_pts, num_funcs=wtab.shape[0], burn=burn)

    # Opacity depends only on idx -> plain gather outside the kernel.
    ops = wtab[:, 6][idx]                                 # (T, B)

    # ParallelIFS ordering: t-major / batch-minor; drop the first `burn` iterations
    # (remove_points = 51 * model_batches).
    xk = xs[burn:].reshape(-1)
    yk = ys[burn:].reshape(-1)
    ok = ops[burn:].reshape(-1)
    xy = jnp.stack([xk, yk], axis=1)                      # ((T-burn)*B, 2)

    # TODO(synk): apply_mv_transform() is not provided in the source; implemented as
    # center-and-fit-to-[-1,1] normalization using the in-kernel min/max reduction.
    translation = (mn + mx) * 0.5                         # (2,)
    scale = 2.0 / jnp.maximum(jnp.max(mx - mn), 1e-8)     # scalar
    tpoints = (xy - translation[None, :]) * scale

    if lf:
        R_90 = jnp.array([[0.0, -1.0], [1.0, 0.0]], dtype=jnp.float32)
        tpoints = tpoints @ R_90

    top_points = jnp.concatenate([tpoints, ok[:, None]], axis=1)   # ((T-burn)*B, 3)
    return top_points


def _ifs_reference(wtab, idx, init_pts):
    """Pure-JAX reference of the sequential IFS recurrence (for validation)."""
    F = wtab.shape[0]
    W = wtab[:, :4].reshape(F, 2, 2)
    bvec = wtab[:, 4:6]

    def step(p, it):                         # p: (2, B), it: (B,)
        Wt = W[it]                           # (B, 2, 2)
        bt = bvec[it]                        # (B, 2)
        newp = jnp.einsum('bij,jb->ib', Wt, p) + bt.T
        return newp, newp

    _, traj = lax.scan(step, init_pts, idx)  # (T, 2, B)
    return traj


if __name__ == "__main__":
    # Small shapes consistent with the module (scaled down from
    # model_batches=25000, num_points=250, remove first 51 iterations).
    F = 4          # number of contractive functions
    B = 2048       # model_batches (small, but a multiple of 8*128 for dense vregs)
    T = 64         # num_points
    BURN = 51      # remove_points = 51 * model_batches ==> drop first 51 iterations

    key = jax.random.PRNGKey(0)
    kw, kb, ko, ki, kp = jax.random.split(key, 5)

    # Deterministic synthetic "checkpoint": contractive 2x2 affine maps + opacity.
    W = 0.45 * jax.random.uniform(kw, (F, 2, 2), minval=-1.0, maxval=1.0)
    bias = jax.random.uniform(kb, (F, 2), minval=-1.0, maxval=1.0)
    opacity = jnp.clip(jax.random.uniform(ko, (F,)), 0.0, 1.0)

    # optimized_probs(): |det(W)| + 0.01, normalized.
    det = W[:, 0, 0] * W[:, 1, 1] - W[:, 0, 1] * W[:, 1, 0]
    probs = jnp.abs(det) + 0.01
    probs = probs / probs.sum()

    # uniform_sample1d(min=-5, max=5, dim=(B, 2)) -> stored as (2, B).
    init_pts = jax.random.uniform(kp, (2, B), minval=-5.0, maxval=5.0)

    # Flattened per-function scalar table for SMEM: [w00,w01,w10,w11,b0,b1,opacity].
    wtab = jnp.concatenate(
        [W.reshape(F, 4), bias, opacity[:, None]], axis=1).astype(jnp.float32)

    # End-to-end forward (matches ModelInfer.forward, first call).
    top_points = model_infer_forward(
        wtab, probs, init_pts, ki, num_points=T, burn=BURN, lf=False)
    top_points = jax.block_until_ready(top_points)
    assert top_points.shape == ((T - BURN) * B, 3), top_points.shape
    assert bool(jnp.all(jnp.isfinite(top_points)))

    # Validate the Pallas recurrence + min/max against a pure-JAX reference.
    idx = jax.random.categorical(ki, jnp.log(probs), shape=(T, B)).astype(jnp.int32)
    xs, ys, mn, mx = parallel_ifs_pallas(wtab, idx, init_pts, num_funcs=F, burn=BURN)
    traj = _ifs_reference(wtab, idx, init_pts)
    assert bool(jnp.allclose(xs, traj[:, 0, :], rtol=1e-4, atol=1e-4))
    assert bool(jnp.allclose(ys, traj[:, 1, :], rtol=1e-4, atol=1e-4))
    assert bool(jnp.allclose(mn, jnp.min(traj[BURN:], axis=(0, 2)), rtol=1e-4, atol=1e-4))
    assert bool(jnp.allclose(mx, jnp.max(traj[BURN:], axis=(0, 2)), rtol=1e-4, atol=1e-4))

    print("KERNEL_OK")
</pallas_src>

<mosaic_0001>
module attributes {stable_mosaic.version = 11 : i64} {
  func.func @_ifs_kernel(%arg0: i32, %arg1: memref<4x7xf32, #tpu.memory_space<smem>>, %arg2: memref<64x8x128xi32, #tpu.memory_space<vmem>>, %arg3: memref<2x8x128xf32, #tpu.memory_space<vmem>>, %arg4: memref<64x8x128xf32, #tpu.memory_space<vmem>>, %arg5: memref<64x8x128xf32, #tpu.memory_space<vmem>>, %arg6: memref<1x4x8x128xf32, #tpu.memory_space<vmem>>) attributes {dimension_semantics = [#tpu.dimension_semantics<parallel>], iteration_bounds = array<i64: 2>, scalar_prefetch = 0 : i64, scratch_operands = 0 : i64, tpu.core_type = #tpu.core_type<tc>, window_params = [{transform_indices = @transform_0, window_bounds = array<i64: 4, 7>}, {transform_indices = @transform_1, window_bounds = array<i64: 64, 8, 128>}, {transform_indices = @transform_2, window_bounds = array<i64: 2, 8, 128>}, {transform_indices = @transform_3, window_bounds = array<i64: 64, 8, 128>}, {transform_indices = @transform_4, window_bounds = array<i64: 64, 8, 128>}, {transform_indices = @transform_5, window_bounds = array<i64: 1, 4, 8, 128>}]} {
    %c0 = arith.constant 0 : index
    %c0_0 = arith.constant 0 : index
    %0 = memref.load %arg1[%c0, %c0_0] : memref<4x7xf32, #tpu.memory_space<smem>>
    %c1 = arith.constant 1 : index
    %c0_1 = arith.constant 0 : index
    %1 = memref.load %arg1[%c1, %c0_1] : memref<4x7xf32, #tpu.memory_space<smem>>
    %c2 = arith.constant 2 : index
    %c0_2 = arith.constant 0 : index
    %2 = memref.load %arg1[%c2, %c0_2] : memref<4x7xf32, #tpu.memory_space<smem>>
    %c3 = arith.constant 3 : index
    %c0_3 = arith.constant 0 : index
    %3 = memref.load %arg1[%c3, %c0_3] : memref<4x7xf32, #tpu.memory_space<smem>>
    %c0_4 = arith.constant 0 : index
    %c1_5 = arith.constant 1 : index
    %4 = memref.load %arg1[%c0_4, %c1_5] : memref<4x7xf32, #tpu.memory_space<smem>>
    %c1_6 = arith.constant 1 : index
    %c1_7 = arith.constant 1 : index
    %5 = memref.load %arg1[%c1_6, %c1_7] : memref<4x7xf32, #tpu.memory_space<smem>>
    %c2_8 = arith.constant 2 : index
    %c1_9 = arith.constant 1 : index
    %6 = memref.load %arg1[%c2_8, %c1_9] : memref<4x7xf32, #tpu.memory_space<smem>>
    %c3_10 = arith.constant 3 : index
    %c1_11 = arith.constant 1 : index
    %7 = memref.load %arg1[%c3_10, %c1_11] : memref<4x7xf32, #tpu.memory_space<smem>>
    %c0_12 = arith.constant 0 : index
    %c2_13 = arith.constant 2 : index
    %8 = memref.load %arg1[%c0_12, %c2_13] : memref<4x7xf32, #tpu.memory_space<smem>>
    %c1_14 = arith.constant 1 : index
    %c2_15 = arith.constant 2 : index
    %9 = memref.load %arg1[%c1_14, %c2_15] : memref<4x7xf32, #tpu.memory_space<smem>>
    %c2_16 = arith.constant 2 : index
    %c2_17 = arith.constant 2 : index
    %10 = memref.load %arg1[%c2_16, %c2_17] : memref<4x7xf32, #tpu.memory_space<smem>>
    %c3_18 = arith.constant 3 : index
    %c2_19 = arith.constant 2 : index
    %11 = memref.load %arg1[%c3_18, %c2_19] : memref<4x7xf32, #tpu.memory_space<smem>>
    %c0_20 = arith.constant 0 : index
    %c3_21 = arith.constant 3 : index
    %12 = memref.load %arg1[%c0_20, %c3_21] : memref<4x7xf32, #tpu.memory_space<smem>>
    %c1_22 = arith.constant 1 : index
    %c3_23 = arith.constant 3 : index
    %13 = memref.load %arg1[%c1_22, %c3_23] : memref<4x7xf32, #tpu.memory_space<smem>>
    %c2_24 = arith.constant 2 : index
    %c3_25 = arith.constant 3 : index
    %14 = memref.load %arg1[%c2_24, %c3_25] : memref<4x7xf32, #tpu.memory_space<smem>>
    %c3_26 = arith.constant 3 : index
    %c3_27 = arith.constant 3 : index
    %15 = memref.load %arg1[%c3_26, %c3_27] : memref<4x7xf32, #tpu.memory_space<smem>>
    %c0_28 = arith.constant 0 : index
    %c4 = arith.constant 4 : index
    %16 = memref.load %arg1[%c0_28, %c4] : memref<4x7xf32, #tpu.memory_space<smem>>
    %c1_29 = arith.constant 1 : index
    %c4_30 = arith.constant 4 : index
    %17 = memref.load %arg1[%c1_29, %c4_30] : memref<4x7xf32, #tpu.memory_space<smem>>
    %c2_31 = arith.constant 2 : index
    %c4_32 = arith.constant 4 : index
    %18 = memref.load %arg1[%c2_31, %c4_32] : memref<4x7xf32, #tpu.memory_space<smem>>
    %c3_33 = arith.constant 3 : index
    %c4_34 = arith.constant 4 : index
    %19 = memref.load %arg1[%c3_33, %c4_34] : memref<4x7xf32, #tpu.memory_space<smem>>
    %c0_35 = arith.constant 0 : index
    %c5 = arith.constant 5 : index
    %20 = memref.load %arg1[%c0_35, %c5] : memref<4x7xf32, #tpu.memory_space<smem>>
    %c1_36 = arith.constant 1 : index
    %c5_37 = arith.constant 5 : index
    %21 = memref.load %arg1[%c1_36, %c5_37] : memref<4x7xf32, #tpu.memory_space<smem>>
    %c2_38 = arith.constant 2 : index
    %c5_39 = arith.constant 5 : index
    %22 = memref.load %arg1[%c2_38, %c5_39] : memref<4x7xf32, #tpu.memory_space<smem>>
    %c3_40 = arith.constant 3 : index
    %c5_41 = arith.constant 5 : index
    %23 = memref.load %arg1[%c3_40, %c5_41] : memref<4x7xf32, #tpu.memory_space<smem>>
    %c0_42 = arith.constant 0 : index
    %c0_43 = arith.constant 0 : index
    %c0_44 = arith.constant 0 : index
    %24 = vector.load %arg3[%c0_42, %c0_43, %c0_44] : memref<2x8x128xf32, #tpu.memory_space<vmem>>, vector<1x8x128xf32>
    %25 = vector.shape_cast %24 : vector<1x8x128xf32> to vector<8x128xf32>
    %c1_45 = arith.constant 1 : index
    %c0_46 = arith.constant 0 : index
    %c0_47 = arith.constant 0 : index
    %26 = vector.load %arg3[%c1_45, %c0_46, %c0_47] : memref<2x8x128xf32, #tpu.memory_space<vmem>>, vector<1x8x128xf32>
    %27 = vector.shape_cast %26 : vector<1x8x128xf32> to vector<8x128xf32>
    %cst = arith.constant 0x7F800000 : f32
    %28 = vector.broadcast %cst : f32 to vector<8x128xf32>
    %cst_48 = arith.constant 0xFF800000 : f32
    %29 = vector.broadcast %cst_48 : f32 to vector<8x128xf32>
    %c0_i32 = arith.constant 0 : i32
    %c51_i32 = arith.constant 51 : i32
    %30 = arith.addi %c0_i32, %c51_i32 : i32
    %c1_i32 = arith.constant 1 : i32
    %31:2 = scf.for %arg7 = %c0_i32 to %30 step %c1_i32 iter_args(%arg8 = %25, %arg9 = %27) -> (vector<8x128xf32>, vector<8x128xf32>)  : i32 {
      %41 = arith.index_cast %arg7 : i32 to index
      %c0_57 = arith.constant 0 : index
      %c0_58 = arith.constant 0 : index
      %42 = vector.load %arg2[%41, %c0_57, %c0_58] : memref<64x8x128xi32, #tpu.memory_space<vmem>>, vector<1x8x128xi32>
      %43 = vector.shape_cast %42 : vector<1x8x128xi32> to vector<8x128xi32>
      %cst_59 = arith.constant 0.000000e+00 : f32
      %44 = vector.broadcast %cst_59 : f32 to vector<8x128xf32>
      %cst_60 = arith.constant 0.000000e+00 : f32
      %45 = vector.broadcast %cst_60 : f32 to vector<8x128xf32>
      %cst_61 = arith.constant 0.000000e+00 : f32
      %46 = vector.broadcast %cst_61 : f32 to vector<8x128xf32>
      %cst_62 = arith.constant 0.000000e+00 : f32
      %47 = vector.broadcast %cst_62 : f32 to vector<8x128xf32>
      %cst_63 = arith.constant 0.000000e+00 : f32
      %48 = vector.broadcast %cst_63 : f32 to vector<8x128xf32>
      %cst_64 = arith.constant 0.000000e+00 : f32
      %49 = vector.broadcast %cst_64 : f32 to vector<8x128xf32>
      %c0_i32_65 = arith.constant 0 : i32
      %50 = vector.broadcast %c0_i32_65 : i32 to vector<8x128xi32>
      %51 = arith.cmpi eq, %43, %50 : vector<8x128xi32>
      %52 = arith.extui %51 : vector<8x128xi1> to vector<8x128xi32>
      %53 = arith.sitofp %52 : vector<8x128xi32> to vector<8x128xf32>
      %54 = vector.broadcast %0 : f32 to vector<8x128xf32>
      %55 = arith.mulf %53, %54 : vector<8x128xf32>
      %56 = arith.addf %44, %55 : vector<8x128xf32>
      %57 = vector.broadcast %4 : f32 to vector<8x128xf32>
      %58 = arith.mulf %53, %57 : vector<8x128xf32>
      %59 = arith.addf %45, %58 : vector<8x128xf32>
      %60 = vector.broadcast %8 : f32 to vector<8x128xf32>
      %61 = arith.mulf %53, %60 : vector<8x128xf32>
      %62 = arith.addf %46, %61 : vector<8x128xf32>
      %63 = vector.broadcast %12 : f32 to vector<8x128xf32>
      %64 = arith.mulf %53, %63 : vector<8x128xf32>
      %65 = arith.addf %47, %64 : vector<8x128xf32>
      %66 = vector.broadcast %16 : f32 to vector<8x128xf32>
      %67 = arith.mulf %53, %66 : vector<8x128xf32>
      %68 = arith.addf %48, %67 : vector<8x128xf32>
      %69 = vector.broadcast %20 : f32 to vector<8x128xf32>
      %70 = arith.mulf %53, %69 : vector<8x128xf32>
      %71 = arith.addf %49, %70 : vector<8x128xf32>
      %c1_i32_66 = arith.constant 1 : i32
      %72 = vector.broadcast %c1_i32_66 : i32 to vector<8x128xi32>
      %73 = arith.cmpi eq, %43, %72 : vector<8x128xi32>
      %74 = arith.extui %73 : vector<8x128xi1> to vector<8x128xi32>
      %75 = arith.sitofp %74 : vector<8x128xi32> to vector<8x128xf32>
      %76 = vector.broadcast %1 : f32 to vector<8x128xf32>
      %77 = arith.mulf %75, %76 : vector<8x128xf32>
      %78 = arith.addf %56, %77 : vector<8x128xf32>
      %79 = vector.broadcast %5 : f32 to vector<8x128xf32>
      %80 = arith.mulf %75, %79 : vector<8x128xf32>
      %81 = arith.addf %59, %80 : vector<8x128xf32>
      %82 = vector.broadcast %9 : f32 to vector<8x128xf32>
      %83 = arith.mulf %75, %82 : vector<8x128xf32>
      %84 = arith.addf %62, %83 : vector<8x128xf32>
      %85 = vector.broadcast %13 : f32 to vector<8x128xf32>
      %86 = arith.mulf %75, %85 : vector<8x128xf32>
      %87 = arith.addf %65, %86 : vector<8x128xf32>
      %88 = vector.broadcast %17 : f32 to vector<8x128xf32>
      %89 = arith.mulf %75, %88 : vector<8x128xf32>
      %90 = arith.addf %68, %89 : vector<8x128xf32>
      %91 = vector.broadcast %21 : f32 to vector<8x128xf32>
      %92 = arith.mulf %75, %91 : vector<8x128xf32>
      %93 = arith.addf %71, %92 : vector<8x128xf32>
      %c2_i32 = arith.constant 2 : i32
      %94 = vector.broadcast %c2_i32 : i32 to vector<8x128xi32>
      %95 = arith.cmpi eq, %43, %94 : vector<8x128xi32>
      %96 = arith.extui %95 : vector<8x128xi1> to vector<8x128xi32>
      %97 = arith.sitofp %96 : vector<8x128xi32> to vector<8x128xf32>
      %98 = vector.broadcast %2 : f32 to vector<8x128xf32>
      %99 = arith.mulf %97, %98 : vector<8x128xf32>
      %100 = arith.addf %78, %99 : vector<8x128xf32>
      %101 = vector.broadcast %6 : f32 to vector<8x128xf32>
      %102 = arith.mulf %97, %101 : vector<8x128xf32>
      %103 = arith.addf %81, %102 : vector<8x128xf32>
      %104 = vector.broadcast %10 : f32 to vector<8x128xf32>
      %105 = arith.mulf %97, %104 : vector<8x128xf32>
      %106 = arith.addf %84, %105 : vector<8x128xf32>
      %107 = vector.broadcast %14 : f32 to vector<8x128xf32>
      %108 = arith.mulf %97, %107 : vector<8x128xf32>
      %109 = arith.addf %87, %108 : vector<8x128xf32>
      %110 = vector.broadcast %18 : f32 to vector<8x128xf32>
      %111 = arith.mulf %97, %110 : vector<8x128xf32>
      %112 = arith.addf %90, %111 : vector<8x128xf32>
      %113 = vector.broadcast %22 : f32 to vector<8x128xf32>
      %114 = arith.mulf %97, %113 : vector<8x128xf32>
      %115 = arith.addf %93, %114 : vector<8x128xf32>
      %c3_i32 = arith.constant 3 : i32
      %116 = vector.broadcast %c3_i32 : i32 to vector<8x128xi32>
      %117 = arith.cmpi eq, %43, %116 : vector<8x128xi32>
      %118 = arith.extui %117 : vector<8x128xi1> to vector<8x128xi32>
      %119 = arith.sitofp %118 : vector<8x128xi32> to vector<8x128xf32>
      %120 = vector.broadcast %3 : f32 to vector<8x128xf32>
      %121 = arith.mulf %119, %120 : vector<8x128xf32>
      %122 = arith.addf %100, %121 : vector<8x128xf32>
      %123 = vector.broadcast %7 : f32 to vector<8x128xf32>
      %124 = arith.mulf %119, %123 : vector<8x128xf32>
      %125 = arith.addf %103, %124 : vector<8x128xf32>
      %126 = vector.broadcast %11 : f32 to vector<8x128xf32>
      %127 = arith.mulf %119, %126 : vector<8x128xf32>
      %128 = arith.addf %106, %127 : vector<8x128xf32>
      %129 = vector.broadcast %15 : f32 to vector<8x128xf32>
      %130 = arith.mulf %119, %129 : vector<8x128xf32>
      %131 = arith.addf %109, %130 : vector<8x128xf32>
      %132 = vector.broadcast %19 : f32 to vector<8x128xf32>
      %133 = arith.mulf %119, %132 : vector<8x128xf32>
      %134 = arith.addf %112, %133 : vector<8x128xf32>
      %135 = vector.broadcast %23 : f32 to vector<8x128xf32>
      %136 = arith.mulf %119, %135 : vector<8x128xf32>
      %137 = arith.addf %115, %136 : vector<8x128xf32>
      %138 = arith.mulf %122, %arg8 : vector<8x128xf32>
      %139 = arith.mulf %125, %arg9 : vector<8x128xf32>
      %140 = arith.addf %138, %139 : vector<8x128xf32>
      %141 = arith.addf %140, %134 : vector<8x128xf32>
      %142 = arith.mulf %128, %arg8 : vector<8x128xf32>
      %143 = arith.mulf %131, %arg9 : vector<8x128xf32>
      %144 = arith.addf %142, %143 : vector<8x128xf32>
      %145 = arith.addf %144, %137 : vector<8x128xf32>
      %146 = vector.shape_cast %141 : vector<8x128xf32> to vector<1x8x128xf32>
      %147 = arith.index_cast %arg7 : i32 to index
      %c0_67 = arith.constant 0 : index
      %c0_68 = arith.constant 0 : index
      %148 = vector.load %arg4[%147, %c0_67, %c0_68] : memref<64x8x128xf32, #tpu.memory_space<vmem>>, vector<1x8x128xf32>
      tpu.vector_store %arg4[%147, %c0_67, %c0_68], %146 {strides = array<i32>} : memref<64x8x128xf32, #tpu.memory_space<vmem>>, vector<1x8x128xf32>,
      %149 = vector.shape_cast %145 : vector<8x128xf32> to vector<1x8x128xf32>
      %150 = arith.index_cast %arg7 : i32 to index
      %c0_69 = arith.constant 0 : index
      %c0_70 = arith.constant 0 : index
      %151 = vector.load %arg5[%150, %c0_69, %c0_70] : memref<64x8x128xf32, #tpu.memory_space<vmem>>, vector<1x8x128xf32>
      tpu.vector_store %arg5[%150, %c0_69, %c0_70], %149 {strides = array<i32>} : memref<64x8x128xf32, #tpu.memory_space<vmem>>, vector<1x8x128xf32>,
      scf.yield %141, %145 : vector<8x128xf32>, vector<8x128xf32>
    }
    %c51_i32_49 = arith.constant 51 : i32
    %c51_i32_50 = arith.constant 51 : i32
    %c13_i32 = arith.constant 13 : i32
    %32 = arith.addi %c51_i32_50, %c13_i32 : i32
    %c1_i32_51 = arith.constant 1 : i32
    %33:6 = scf.for %arg7 = %c51_i32_50 to %32 step %c1_i32_51 iter_args(%arg8 = %31#0, %arg9 = %31#1, %arg10 = %28, %arg11 = %28, %arg12 = %29, %arg13 = %29) -> (vector<8x128xf32>, vector<8x128xf32>, vector<8x128xf32>, vector<8x128xf32>, vector<8x128xf32>, vector<8x128xf32>)  : i32 {
      %41 = arith.index_cast %arg7 : i32 to index
      %c0_57 = arith.constant 0 : index
      %c0_58 = arith.constant 0 : index
      %42 = vector.load %arg2[%41, %c0_57, %c0_58] : memref<64x8x128xi32, #tpu.memory_space<vmem>>, vector<1x8x128xi32>
      %43 = vector.shape_cast %42 : vector<1x8x128xi32> to vector<8x128xi32>
      %cst_59 = arith.constant 0.000000e+00 : f32
      %44 = vector.broadcast %cst_59 : f32 to vector<8x128xf32>
      %cst_60 = arith.constant 0.000000e+00 : f32
      %45 = vector.broadcast %cst_60 : f32 to vector<8x128xf32>
      %cst_61 = arith.constant 0.000000e+00 : f32
      %46 = vector.broadcast %cst_61 : f32 to vector<8x128xf32>
      %cst_62 = arith.constant 0.000000e+00 : f32
      %47 = vector.broadcast %cst_62 : f32 to vector<8x128xf32>
      %cst_63 = arith.constant 0.000000e+00 : f32
      %48 = vector.broadcast %cst_63 : f32 to vector<8x128xf32>
      %cst_64 = arith.constant 0.000000e+00 : f32
      %49 = vector.broadcast %cst_64 : f32 to vector<8x128xf32>
      %c0_i32_65 = arith.constant 0 : i32
      %50 = vector.broadcast %c0_i32_65 : i32 to vector<8x128xi32>
      %51 = arith.cmpi eq, %43, %50 : vector<8x128xi32>
      %52 = arith.extui %51 : vector<8x128xi1> to vector<8x128xi32>
      %53 = arith.sitofp %52 : vector<8x128xi32> to vector<8x128xf32>
      %54 = vector.broadcast %0 : f32 to vector<8x128xf32>
      %55 = arith.mulf %53, %54 : vector<8x128xf32>
      %56 = arith.addf %44, %55 : vector<8x128xf32>
      %57 = vector.broadcast %4 : f32 to vector<8x128xf32>
      %58 = arith.mulf %53, %57 : vector<8x128xf32>
      %59 = arith.addf %45, %58 : vector<8x128xf32>
      %60 = vector.broadcast %8 : f32 to vector<8x128xf32>
      %61 = arith.mulf %53, %60 : vector<8x128xf32>
      %62 = arith.addf %46, %61 : vector<8x128xf32>
      %63 = vector.broadcast %12 : f32 to vector<8x128xf32>
      %64 = arith.mulf %53, %63 : vector<8x128xf32>
      %65 = arith.addf %47, %64 : vector<8x128xf32>
      %66 = vector.broadcast %16 : f32 to vector<8x128xf32>
      %67 = arith.mulf %53, %66 : vector<8x128xf32>
      %68 = arith.addf %48, %67 : vector<8x128xf32>
      %69 = vector.broadcast %20 : f32 to vector<8x128xf32>
      %70 = arith.mulf %53, %69 : vector<8x128xf32>
      %71 = arith.addf %49, %70 : vector<8x128xf32>
      %c1_i32_66 = arith.constant 1 : i32
      %72 = vector.broadcast %c1_i32_66 : i32 to vector<8x128xi32>
      %73 = arith.cmpi eq, %43, %72 : vector<8x128xi32>
      %74 = arith.extui %73 : vector<8x128xi1> to vector<8x128xi32>
      %75 = arith.sitofp %74 : vector<8x128xi32> to vector<8x128xf32>
      %76 = vector.broadcast %1 : f32 to vector<8x128xf32>
      %77 = arith.mulf %75, %76 : vector<8x128xf32>
      %78 = arith.addf %56, %77 : vector<8x128xf32>
      %79 = vector.broadcast %5 : f32 to vector<8x128xf32>
      %80 = arith.mulf %75, %79 : vector<8x128xf32>
      %81 = arith.addf %59, %80 : vector<8x128xf32>
      %82 = vector.broadcast %9 : f32 to vector<8x128xf32>
      %83 = arith.mulf %75, %82 : vector<8x128xf32>
      %84 = arith.addf %62, %83 : vector<8x128xf32>
      %85 = vector.broadcast %13 : f32 to vector<8x128xf32>
      %86 = arith.mulf %75, %85 : vector<8x128xf32>
      %87 = arith.addf %65, %86 : vector<8x128xf32>
      %88 = vector.broadcast %17 : f32 to vector<8x128xf32>
      %89 = arith.mulf %75, %88 : vector<8x128xf32>
      %90 = arith.addf %68, %89 : vector<8x128xf32>
      %91 = vector.broadcast %21 : f32 to vector<8x128xf32>
      %92 = arith.mulf %75, %91 : vector<8x128xf32>
      %93 = arith.addf %71, %92 : vector<8x128xf32>
      %c2_i32 = arith.constant 2 : i32
      %94 = vector.broadcast %c2_i32 : i32 to vector<8x128xi32>
      %95 = arith.cmpi eq, %43, %94 : vector<8x128xi32>
      %96 = arith.extui %95 : vector<8x128xi1> to vector<8x128xi32>
      %97 = arith.sitofp %96 : vector<8x128xi32> to vector<8x128xf32>
      %98 = vector.broadcast %2 : f32 to vector<8x128xf32>
      %99 = arith.mulf %97, %98 : vector<8x128xf32>
      %100 = arith.addf %78, %99 : vector<8x128xf32>
      %101 = vector.broadcast %6 : f32 to vector<8x128xf32>
      %102 = arith.mulf %97, %101 : vector<8x128xf32>
      %103 = arith.addf %81, %102 : vector<8x128xf32>
      %104 = vector.broadcast %10 : f32 to vector<8x128xf32>
      %105 = arith.mulf %97, %104 : vector<8x128xf32>
      %106 = arith.addf %84, %105 : vector<8x128xf32>
      %107 = vector.broadcast %14 : f32 to vector<8x128xf32>
      %108 = arith.mulf %97, %107 : vector<8x128xf32>
      %109 = arith.addf %87, %108 : vector<8x128xf32>
      %110 = vector.broadcast %18 : f32 to vector<8x128xf32>
      %111 = arith.mulf %97, %110 : vector<8x128xf32>
      %112 = arith.addf %90, %111 : vector<8x128xf32>
      %113 = vector.broadcast %22 : f32 to vector<8x128xf32>
      %114 = arith.mulf %97, %113 : vector<8x128xf32>
      %115 = arith.addf %93, %114 : vector<8x128xf32>
      %c3_i32 = arith.constant 3 : i32
      %116 = vector.broadcast %c3_i32 : i32 to vector<8x128xi32>
      %117 = arith.cmpi eq, %43, %116 : vector<8x128xi32>
      %118 = arith.extui %117 : vector<8x128xi1> to vector<8x128xi32>
      %119 = arith.sitofp %118 : vector<8x128xi32> to vector<8x128xf32>
      %120 = vector.broadcast %3 : f32 to vector<8x128xf32>
      %121 = arith.mulf %119, %120 : vector<8x128xf32>
      %122 = arith.addf %100, %121 : vector<8x128xf32>
      %123 = vector.broadcast %7 : f32 to vector<8x128xf32>
      %124 = arith.mulf %119, %123 : vector<8x128xf32>
      %125 = arith.addf %103, %124 : vector<8x128xf32>
      %126 = vector.broadcast %11 : f32 to vector<8x128xf32>
      %127 = arith.mulf %119, %126 : vector<8x128xf32>
      %128 = arith.addf %106, %127 : vector<8x128xf32>
      %129 = vector.broadcast %15 : f32 to vector<8x128xf32>
      %130 = arith.mulf %119, %129 : vector<8x128xf32>
      %131 = arith.addf %109, %130 : vector<8x128xf32>
      %132 = vector.broadcast %19 : f32 to vector<8x128xf32>
      %133 = arith.mulf %119, %132 : vector<8x128xf32>
      %134 = arith.addf %112, %133 : vector<8x128xf32>
      %135 = vector.broadcast %23 : f32 to vector<8x128xf32>
      %136 = arith.mulf %119, %135 : vector<8x128xf32>
      %137 = arith.addf %115, %136 : vector<8x128xf32>
      %138 = arith.mulf %122, %arg8 : vector<8x128xf32>
      %139 = arith.mulf %125, %arg9 : vector<8x128xf32>
      %140 = arith.addf %138, %139 : vector<8x128xf32>
      %141 = arith.addf %140, %134 : vector<8x128xf32>
      %142 = arith.mulf %128, %arg8 : vector<8x128xf32>
      %143 = arith.mulf %131, %arg9 : vector<8x128xf32>
      %144 = arith.addf %142, %143 : vector<8x128xf32>
      %145 = arith.addf %144, %137 : vector<8x128xf32>
      %146 = vector.shape_cast %141 : vector<8x128xf32> to vector<1x8x128xf32>
      %147 = arith.index_cast %arg7 : i32 to index
      %c0_67 = arith.constant 0 : index
      %c0_68 = arith.constant 0 : index
      %148 = vector.load %arg4[%147, %c0_67, %c0_68] : memref<64x8x128xf32, #tpu.memory_space<vmem>>, vector<1x8x128xf32>
      tpu.vector_store %arg4[%147, %c0_67, %c0_68], %146 {strides = array<i32>} : memref<64x8x128xf32, #tpu.memory_space<vmem>>, vector<1x8x128xf32>,
      %149 = vector.shape_cast %145 : vector<8x128xf32> to vector<1x8x128xf32>
      %150 = arith.index_cast %arg7 : i32 to index
      %c0_69 = arith.constant 0 : index
      %c0_70 = arith.constant 0 : index
      %151 = vector.load %arg5[%150, %c0_69, %c0_70] : memref<64x8x128xf32, #tpu.memory_space<vmem>>, vector<1x8x128xf32>
      tpu.vector_store %arg5[%150, %c0_69, %c0_70], %149 {strides = array<i32>} : memref<64x8x128xf32, #tpu.memory_space<vmem>>, vector<1x8x128xf32>,
      %152 = arith.minimumf %arg10, %141 : vector<8x128xf32>
      %153 = arith.minimumf %arg11, %145 : vector<8x128xf32>
      %154 = arith.maximumf %arg12, %141 : vector<8x128xf32>
      %155 = arith.maximumf %arg13, %145 : vector<8x128xf32>
      scf.yield %141, %145, %152, %153, %154, %155 : vector<8x128xf32>, vector<8x128xf32>, vector<8x128xf32>, vector<8x128xf32>, vector<8x128xf32>, vector<8x128xf32>
    }
    %c13_i32_52 = arith.constant 13 : i32
    %34 = vector.shape_cast %33#2 : vector<8x128xf32> to vector<1x8x128xf32>
    %35 = vector.shape_cast %33#3 : vector<8x128xf32> to vector<1x8x128xf32>
    %36 = vector.shape_cast %33#4 : vector<8x128xf32> to vector<1x8x128xf32>
    %37 = vector.shape_cast %33#5 : vector<8x128xf32> to vector<1x8x128xf32>
    %38 = tpu.concatenate %34, %35, %36, %37 in 0 : vector<1x8x128xf32>, vector<1x8x128xf32>, vector<1x8x128xf32>, vector<1x8x128xf32> -> vector<4x8x128xf32>
    %39 = vector.shape_cast %38 : vector<4x8x128xf32> to vector<1x4x8x128xf32>
    %c0_53 = arith.constant 0 : index
    %c0_54 = arith.constant 0 : index
    %c0_55 = arith.constant 0 : index
    %c0_56 = arith.constant 0 : index
    %40 = vector.load %arg6[%c0_53, %c0_54, %c0_55, %c0_56] : memref<1x4x8x128xf32, #tpu.memory_space<vmem>>, vector<1x4x8x128xf32>
    tpu.vector_store %arg6[%c0_53, %c0_54, %c0_55, %c0_56], %39 {strides = array<i32>} : memref<1x4x8x128xf32, #tpu.memory_space<vmem>>, vector<1x4x8x128xf32>,
    return
  }
  func.func @transform_0(%arg0: i32) -> (i32, i32) {
    %c0_i32 = arith.constant 0 : i32
    %c0_i32_0 = arith.constant 0 : i32
    %c0_i32_1 = arith.constant 0 : i32
    return %c0_i32, %c0_i32_0 : i32, i32
  }
  func.func @transform_1(%arg0: i32) -> (i32, i32, i32) {
    %c0_i32 = arith.constant 0 : i32
    %c0_i32_0 = arith.constant 0 : i32
    %c0_i32_1 = arith.constant 0 : i32
    return %c0_i32, %arg0, %c0_i32_0 : i32, i32, i32
  }
  func.func @transform_2(%arg0: i32) -> (i32, i32, i32) {
    %c0_i32 = arith.constant 0 : i32
    %c0_i32_0 = arith.constant 0 : i32
    %c0_i32_1 = arith.constant 0 : i32
    return %c0_i32, %arg0, %c0_i32_0 : i32, i32, i32
  }
  func.func @transform_3(%arg0: i32) -> (i32, i32, i32) {
    %c0_i32 = arith.constant 0 : i32
    %c0_i32_0 = arith.constant 0 : i32
    %c0_i32_1 = arith.constant 0 : i32
    return %c0_i32, %arg0, %c0_i32_0 : i32, i32, i32
  }
  func.func @transform_4(%arg0: i32) -> (i32, i32, i32) {
    %c0_i32 = arith.constant 0 : i32
    %c0_i32_0 = arith.constant 0 : i32
    %c0_i32_1 = arith.constant 0 : i32
    return %c0_i32, %arg0, %c0_i32_0 : i32, i32, i32
  }
  func.func @transform_5(%arg0: i32) -> (i32, i32, i32, i32) {
    %c0_i32 = arith.constant 0 : i32
    %c0_i32_0 = arith.constant 0 : i32
    %c0_i32_1 = arith.constant 0 : i32
    %c0_i32_2 = arith.constant 0 : i32
    return %arg0, %c0_i32, %c0_i32_0, %c0_i32_1 : i32, i32, i32, i32
  }
}

</mosaic_0001>

<bundles_post_ra>
// kernel: tpu_custom_call.1
= control target key start
LH: loop header
LB: loop body
LE: loop exit
PB: predicated region body
PF: predicated region fallthrough
CT: control target
= control target key end

     0   :  { %s1996_s0 = inlined_call_operand.hbm [shape: f32[4,7], index: 0, kind: input, shape index: {}]   ;;  %s1997_s1 = inlined_call_operand.hbm [shape: s32[64,16,128], index: 1, kind: input, shape index: {}]   ;;  %s1998_s2 = inlined_call_operand.hbm [shape: f32[2,16,128], index: 2, kind: input, shape index: {}]   ;;  %s1999_s3 = inlined_call_operand.hbm [shape: f32[64,16,128], index: 3, kind: output, shape index: {0}]   ;;  %s2000_s4 = inlined_call_operand.hbm [shape: f32[64,16,128], index: 4, kind: output, shape index: {1}]   ;;  %s2001_s5 = inlined_call_operand.hbm [shape: f32[2,4,8,128], index: 5, kind: output, shape index: {2}]  }
   0x1   :  { %2025 = sst [smem:[#allocation30_spill]] %s1996_s0 }
   0x2   :  { %2026 = sst [smem:[#allocation31_spill]] %s1997_s1 }
   0x3   :  { %2027 = sst [smem:[#allocation32_spill]] %s1998_s2 }
   0x4   :  { %2028 = sst [smem:[#allocation33_spill]] %s1999_s3 }
   0x5   :  { %2029 = sst [smem:[#allocation34_spill]] %s2000_s4 }
   0x6   :  { %2030 = sst [smem:[#allocation35_spill]] %s2001_s5 }
   0x7   :  { %11 = vsyncpa [#allocation5], 0 }
   0x8   :  { %12 = vsyncpa [#allocation3], 0 }
   0x9   :  { %14 = vsyncpa [#allocation3 + $0x1], 0 }
   0xa   :  { %15 = vsyncpa [#allocation8], 0 }
   0xb   :  { %17 = vsyncpa [#allocation8 + $0x1], 0 }
   0xc   :  { %18 = vsyncpa [#allocation4], 0 }
   0xd   :  { %20 = vsyncpa [#allocation4 + $0x1], 0 }
   0xe   :  { %21 = vsyncpa [#allocation11], 0 }
   0xf   :  { %23 = vsyncpa [#allocation11 + $0x1], 0  ;;  %s1385_s18 = smov 0   ;;  %s1387_s19 = smov 0  }
  0x10   :  { %s1389_s20 = smov 0   ;;  %s1391_s21 = smov 0  }
  0x11 LB: > { %2031 = sst [smem:[#allocation18_spill]] %s1287_s18  ;;  %s1406_s22 = sadd.s32 4294967295, %s1299_s21   ;;  %s1299_s21 = sphi %s1391_s21, %s2079_s21   ;;  %s1295_s20 = sphi %s1389_s20, %s2082_s20   ;;  %s1291_s19 = sphi %s1387_s19, %s2081_s19   ;;  %s1287_s18 = sphi %s1385_s18, %s2080_s18  }
  0x12   : > { %2032 = sst [smem:[#allocation19_spill]] %s1291_s19  ;;  %s2003_s23 = sadd.s32 4294967294, %s1299_s21  }
  0x13   : > { %2033 = sst [smem:[#allocation20_spill]] %s1295_s20  ;;  %s1410_s24 = sadd.s32 1, %s1299_s21  }
  0x14   : > { %2034 = sst [smem:[#allocation21_spill]] %s1299_s21  ;;  %s57_s25 = sadd.s32 1, %s1295_s20 }
  0x15   : > { %2035 = sst [smem:[#allocation22_spill]] %s1406_s22  ;;  %s54_s26 = ssub.s32 %s1299_s21, %s1410_s24 }
  0x16   : > { %2036 = sst [smem:[#allocation23_spill]] %s1410_s24  ;;  %p64_p0 = scmp.ne.s32.totalorder %s1295_s20, %s1291_s19 }
  0x17   : > { %p55_p1 = scmp.eq.s32.totalorder %s54_s26, 0  ;;  %p65_p2 = scmp.eq.s32.totalorder %s1299_s21, 0 }
  0x18   : > { %p70_p3 = scmp.ne.s32.totalorder %s1291_s19, %s1287_s18  ;;  %p2002_p4 = scmp.eq.s32.totalorder %s1406_s22, 0 }
  0x19   : > { %s1422_s27 = scalar_select %p55_p1, %s1295_s20, %s57_s25  }
  0x1a   : > { %p1424_p5 = por %p65_p2, %p64_p0  ;;  %p1430_p6 = por %p2002_p4, %p70_p3 }
  0x1b   : > { %2037 = sst [smem:[#allocation24_spill]] %s1422_s27  ;;  %p120_p7 = scmp.eq.s32.totalorder %s1406_s22, 1 }
  0x1c   : > { %s2039_s29 = scalar_select %p1430_p6, 1, 0 }
  0x1d   : > { %p126_p8 = scmp.eq.s32.totalorder %s2003_s23, 1  ;;  %p834_p9 = scmp.ge.s32.totalorder %s1299_s21, 1 }
  0x1e   : > { %p185_p10 = scmp.lt.s32.totalorder %s1299_s21, 3  ;;  %p1439_p11 = por %p120_p7, %p64_p0 }
  0x1f   : > { %p1443_p12 = por %p126_p8, %p70_p3  ;;  %p928_p4 = scmp.lt.s32.totalorder %s1299_s21, 2 }
  0x20   : > { %s2040_s30 = scalar_select %p1439_p11, 1, 0 }
  0x21   : > { %s2042_s6 = scalar_select %p1443_p12, 1, 0 }
  0x22   : > { %2041 = sst [smem:[#allocation25_spill]] %s2040_s30  ;;  %p1447_p13 = pnand %p834_p9, %p185_p10 }
  0x23   : > { %2043 = sst [smem:[#allocation26_spill]] %s2042_s6  ;;  %s1456_s8 = sand.u32 1, %s1295_s20  }
  0x24   : > { %p906_p2 = pneg %p1447_p13  ;;  %s838_s9 = sshll.u32 %s1299_s21, 7 }
  0x25   : > { %p2045_p0 = scmp.eq.s32.totalorder %s1406_s22, 0  ;;  %p1463_p3 = pnand %p928_p4, %p1424_p5 }
  0x26   : > { %s837_s11 = sshll.u32 %s1456_s8, 9  ;;  %s2047_s0 = sld [smem:[#allocation30_spill]] }
  0x27   : > { %p907_p7 = pnand %p906_p2, %p2045_p0 }
  0x29   : > { %p1054_p9 = pneg %p907_p7 }
  0x2c   : > { %s1052_s14 = scalar_lea.hbm %s2047_s0, 64 }
  0x2d   : > { %p1053_p8 = scmp.ne.s32.totalorder %s2047_s0, %s1052_s14  ;;  %p1059_p2 = scmp.lt.u32.totalorder %s1052_s14, %s2047_s0 }
  0x2f   : > { %p1055_p10 = pnand %p1054_p9, %p1053_p8 }
  0x31   : > { %p1056_p1 = pneg %p1055_p10 }
  0x33   : > { %p1061_p4 = pnand %p1059_p2, %p1056_p1 }
  0x35   : > { %1064 = shalt.err (!%p1061_p4)
}
  0x36   : > { %s1341_s26 = smov [#allocation2]   ;;  %s2048_s1 = sld [smem:[#allocation31_spill]] }
  0x37   : > { %909 = dma.hbm_to_smem (!%p907_p7), %s2047_s0, 64, %s1341_s26, [#allocation5]  }
  0x38   : > { %s211_s14 = scalar_lea.vmem [#allocation6], %s837_s11  ;;  %s208_s23 = scalar_lea.sflag [#allocation3], %s1456_s8 }
  0x39   : > { %s217_s16 = sshll.u32 %s211_s14, 4  ;;  %p1067_p1 = pneg %p1463_p3  ;;  %s1487_s16 = int_to_ptr.vmem [resolvable:$true] %s217_s16 }
  0x3c   : > { %s1485_s15 = scalar_lea.hbm %s2048_s1, %s838_s9  ;;  %s1070_s28 = scalar_lea.hbm %s2048_s1, 16384 }
  0x3d   : > { %s1065_s17 = scalar_lea.hbm %s1485_s15, 8192  ;;  %p1071_p8 = scmp.lt.u32.totalorder %s1485_s15, %s2048_s1 }
  0x3e   : > { %p1066_p5 = scmp.ne.s32.totalorder %s1485_s15, %s1065_s17  ;;  %p1072_p9 = scmp.lt.u32.totalorder %s1070_s28, %s1065_s17 }
  0x3f   : > { %p1074_p2 = scmp.lt.u32.totalorder %s1065_s17, %s1485_s15 }
  0x40   : > { %p1068_p0 = pnand %p1067_p1, %p1066_p5  ;;  %p1073_p10 = por %p1072_p9, %p1071_p8 }
  0x42   : > { %p1069_p7 = pneg %p1068_p0  ;;  %p1075_p4 = por %p1074_p2, %p1073_p10 }
  0x44   : > { %p1076_p12 = pnand %p1075_p4, %p1069_p7 }
  0x46   : > { %1079 = shalt.err (!%p1076_p12)
}
  0x47   : > { %s1080_s11 = scalar_lea.vmem %s1487_s16, 8192  ;;  %s1342_s14 = smov [#allocation6]  }
  0x48   : > { %p1081_p5 = scmp.ne.s32.totalorder %s1487_s16, %s1080_s11  ;;  %s1085_s25 = sshll.u32 %s1342_s14, 4  ;;  %s1086_s25 = int_to_ptr.vmem [resolvable:$false] %s1085_s25 }
  0x49   : > { %s1087_s26 = scalar_lea.vmem %s1086_s25, 16384  ;;  %p1088_p6 = scmp.lt.s32.totalorder %s1487_s16, %s1086_s25 }
  0x4a   : > { %p1083_p0 = pnand %p1081_p5, %p1067_p1  ;;  %p1089_p8 = scmp.lt.s32.totalorder %s1087_s26, %s1080_s11 }
  0x4c   : > { %p1084_p11 = pneg %p1083_p0  ;;  %p1090_p9 = por %p1089_p8, %p1088_p6 }
  0x4e   : > { %p1091_p10 = pnand %p1090_p9, %p1084_p11 }
  0x50   : > { %1094 = shalt.err (!%p1091_p10)
}
  0x51   : > { %s1343_s17 = smov 256   ;;  %s1344_s28 = smov 128  }
  0x52   : > { %s1345_s12 = smov 8   ;;  %s839_s13 = sshll.u32 %s1456_s8, 4 }
  0x53   : > { %913 = dma.hbm_to_vmem [thread:$0]  (!%p1463_p3), %s1485_s15, 8192, %s1487_s16, %s208_s23, %s1343_s17, %s1344_s28, %s1345_s12  }
  0x54   : > { %s2049_s2 = sld [smem:[#allocation32_spill]]  ;;  %s231_s26 = scalar_lea.vmem [#allocation7], %s839_s13 }
  0x55   : > { %s237_s0 = sshll.u32 %s231_s26, 4  ;;  %s228_s1 = scalar_lea.sflag [#allocation8], %s1456_s8  ;;  %s1528_s0 = int_to_ptr.vmem [resolvable:$true] %s237_s0 }
  0x5a   : > { %s1526_s25 = scalar_lea.hbm %s2049_s2, %s838_s9  ;;  %s1100_s9 = scalar_lea.hbm %s2049_s2, 512 }
  0x5b   : > { %s1095_s27 = scalar_lea.hbm %s1526_s25, 256  ;;  %p1101_p7 = scmp.lt.u32.totalorder %s1526_s25, %s2049_s2 }
  0x5c   : > { %p1096_p6 = scmp.ne.s32.totalorder %s1526_s25, %s1095_s27  ;;  %p1102_p2 = scmp.lt.u32.totalorder %s1100_s9, %s1095_s27 }
  0x5d   : > { %p1104_p5 = scmp.lt.u32.totalorder %s1095_s27, %s1526_s25 }
  0x5e   : > { %p1098_p11 = pnand %p1096_p6, %p1067_p1  ;;  %p1103_p4 = por %p1102_p2, %p1101_p7 }
  0x60   : > { %p1099_p12 = pneg %p1098_p11  ;;  %p1105_p0 = por %p1104_p5, %p1103_p4 }
  0x62   : > { %p1106_p8 = pnand %p1105_p0, %p1099_p12 }
  0x64   : > { %1109 = shalt.err (!%p1106_p8)
}
  0x65   : > { %s1110_s13 = scalar_lea.vmem %s1528_s0, 256  ;;  %s1346_s14 = smov [#allocation7]  }
  0x66   : > { %p1111_p9 = scmp.ne.s32.totalorder %s1528_s0, %s1110_s13  ;;  %s1115_s26 = sshll.u32 %s1346_s14, 4  ;;  %s1116_s26 = int_to_ptr.vmem [resolvable:$false] %s1115_s26 }
  0x67   : > { %s1117_s15 = scalar_lea.vmem %s1116_s26, 512  ;;  %p1118_p11 = scmp.lt.s32.totalorder %s1528_s0, %s1116_s26 }
  0x68   : > { %p1113_p10 = pnand %p1111_p9, %p1067_p1  ;;  %p1119_p7 = scmp.lt.s32.totalorder %s1117_s15, %s1110_s13 }
  0x6a   : > { %p1114_p6 = pneg %p1113_p10  ;;  %p1120_p2 = por %p1119_p7, %p1118_p11 }
  0x6c   : > { %p1121_p4 = pnand %p1120_p2, %p1114_p6 }
  0x6e   : > { %1124 = shalt.err (!%p1121_p4)
}
  0x6f   : > { %916 = dma.hbm_to_vmem [thread:$0]  (!%p1463_p3), %s1526_s25, 256, %s1528_s0, %s228_s1, %s1343_s17, %s1344_s28, %s1345_s12  }
  0x70   : > { %249 = sbr.rel (%p1447_p13) target bundleno = 279 (0x117), region = 32 }
  0x77   : > { %p2050_p1 = scmp.eq.s32.totalorder %s1406_s22, 0 }
  0x79   : > { %1266 = dma.done.wait (%p2050_p1), [#allocation5], 64   ;;  %p2051_p12 = pmov %p2050_p1 }
  0x7a   : > { %s1566_s27 = sand.u32 1, %s1291_s19   ;;  %p2053_p3 = scmp.ne.s32.totalorder %s2039_s29, 0 }
  0x7b   : > { %1268 = vsyncadd (%p2051_p12), [#allocation5], 4294967232  ;;  %2052 = sst [smem:[#allocation27_spill]] %s1566_s27  ;;  %s1569_s10 = sshll.u32 %s1566_s27, 9 }
  0x7c   : > { %s256_s8 = scalar_lea.sflag [#allocation3], %s1566_s27 }
  0x7d   : > { %1270 = dma.done.wait (%p2053_p3), %s256_s8, 8192  }
  0x7e   : > { %1272 = vsyncadd (%p2053_p3), %s256_s8, 4294959104  ;;  %s844_s1 = sshll.u32 %s1566_s27, 4  ;;  %s265_s7 = scalar_lea.sflag [#allocation8], %s1566_s27 }
  0x7f   : > { %s268_s17 = scalar_lea.vmem [#allocation7], %s844_s1 }
  0x80   : > { %1274 = dma.done.wait (%p2053_p3), %s265_s7, 256  }
  0x81   : > { %1276 = vsyncadd (%p2053_p3), %s265_s7, 4294967040 }
  0x82   : > { %273 = sfence }
  0x83   : > { %v335_v0 = vld [vmem:[%s268_s17] sm:$0xff]   ;;  %v871_v1 = vld [vmem:[%s268_s17 + $0x8] sm:$0xff]   ;;  %s847_s28 = sshll.u32 %s1566_s27, 5  ;;  %s1584_s12 = sld [smem:[#allocation2]] }
  0x84   : > { %s1586_s25 = sld [smem:[#allocation2 + $0x80]]  ;;  %s1592_s23 = sld [smem:[#allocation2 + $0x1]] }
  0x85   : > { %s1588_s16 = sld [smem:[#allocation2 + $0x100]]  ;;  %s1594_s11 = sld [smem:[#allocation2 + $0x81]] }
  0x86   : > { %s1590_s9 = sld [smem:[#allocation2 + $0x180]]  ;;  %s1596_s13 = sld [smem:[#allocation2 + $0x101]] }
  0x87   : > { %s1598_s29 = sld [smem:[#allocation2 + $0x181]]  ;;  %s1600_s14 = sld [smem:[#allocation2 + $0x2]] }
  0x88   : > { %s1602_s26 = sld [smem:[#allocation2 + $0x82]]  ;;  %s1608_s1 = sld [smem:[#allocation2 + $0x3]] }
  0x89   : > { %s1604_s15 = sld [smem:[#allocation2 + $0x102]]  ;;  %s1610_s7 = sld [smem:[#allocation2 + $0x83]] }
  0x8a   : > { %s1606_s8 = sld [smem:[#allocation2 + $0x182]]  ;;  %s1612_s17 = sld [smem:[#allocation2 + $0x103]] }
  0x8b   : > { %s1614_s0 = sld [smem:[#allocation2 + $0x183]]  ;;  %s1616_s2 = sld [smem:[#allocation2 + $0x4]] }
  0x8c   : > { %s1618_s20 = sld [smem:[#allocation2 + $0x84]]  ;;  %s1624_s21 = sld [smem:[#allocation2 + $0x5]] }
  0x8d   : > { %s1620_s19 = sld [smem:[#allocation2 + $0x104]]  ;;  %s1626_s6 = sld [smem:[#allocation2 + $0x85]] }
  0x8e   : > { %s1622_s24 = sld [smem:[#allocation2 + $0x184]]  ;;  %s1628_s18 = sld [smem:[#allocation2 + $0x105]] }
  0x8f   : > { %s1630_s5 = sld [smem:[#allocation2 + $0x185]]  ;;  %s1633_s3 = scalar_lea.vmem [#allocation9], %s1569_s10 }
  0x90   : > { %2054 = sst [smem:[#allocation28_spill]] %s1633_s3  ;;  %s1636_s27 = scalar_lea.vmem [#allocation10], %s1569_s10 }
  0x91   : > { %s1638_s4 = scalar_lea.vmem [#allocation12], %s847_s28  ;;  %s1644_s30 = smov 0  }
  0x92   : > { %2055 = sst [smem:[#allocation29_spill]] %s1638_s4 }
  0x93 LB: >> { %v352_v2 = vstv %s1584_s12  ;;  %v355_v3 = vstv %s1592_s23  ;;  %v364_v4 = vstv %s1616_s2  ;;  %s1659_s28 = sshll.u32 %s1311_s30, 3  ;;  %v373_v5 = vstv %s1586_s25  ;;  %s2056_s22 = scalar_lea.vmem [#allocation6], %s1569_s10  ;;  %s1311_s30 = sphi %s1644_s30, %s343_s30   ;;  %v1307_v0 = vphi %v335_v0, %v2058_v0   ;;  %v1303_v1 = vphi %v871_v1, %v2057_v1  }
  0x94   : >> { %v376_v6 = vstv %s1594_s11  ;;  %v385_v7 = vstv %s1618_s20  ;;  %v394_v8 = vstv %s1588_s16  ;;  %s347_s4 = scalar_lea.vmem %s2056_s22, %s1659_s28 [#allocation6]  ;;  %v397_v9 = vstv %s1596_s13  ;;  %s443_s22 = scalar_lea.vmem %s1636_s27, %s1659_s28 [#allocation10] }
  0x95   : >> { %v406_v10 = vstv %s1620_s19  ;;  %v415_v11 = vstv %s1590_s9  ;;  %v418_v12 = vstv %s1598_s29  ;;  %v348_v13 = vld [vmem:[%s347_s4] sm:$0xff]  ;;  %v1347_v17 = vmov 0.0   ;;  %s441_s4 = scalar_lea.vmem %s1633_s3, %s1659_s28 [#allocation9]  ;;  %s343_s30 = sadd.s32 1, %s1311_s30  }
  0x96   : >> { %v427_v14 = vstv %s1622_s24  ;;  %v358_v15 = vstv %s1600_s14  ;;  %v361_v16 = vstv %s1608_s1  ;;  %vm349_vm0 = vcmp.eq.s32.totalorder %v348_v13, 0  ;;  %p340_p13 = scmp.ge.s32.totalorder %s343_s30, 51  }
  0x97   : >> { %vm370_vm1 = vcmp.eq.s32.totalorder %v348_v13, 1  ;;  %vm391_vm2 = vcmp.eq.s32.totalorder %v348_v13, 2  ;;  %vm412_vm3 = vcmp.eq.s32.totalorder %v348_v13, 3  ;;  %v873_v18 = vsel %vm349_vm0, 1.0, %v1347_v17  ;;  %s1760_s28 = smov (%p340_p13), 51  }
  0x98   : >> { %v874_v19 = vsel %vm370_vm1, 1.0, %v1347_v17  ;;  %v875_v20 = vsel %vm391_vm2, 1.0, %v1347_v17  ;;  %v876_v21 = vsel %vm412_vm3, 1.0, %v1347_v17  ;;  %v353_v22 = vmul.f32 %v873_v18, %v352_v2 }
  0x99   : >> { %v356_v23 = vmul.f32 %v873_v18, %v355_v3  ;;  %v365_v24 = vmul.f32 %v873_v18, %v364_v4  ;;  %v374_v25 = vmul.f32 %v874_v19, %v373_v5  ;;  %v377_v26 = vmul.f32 %v874_v19, %v376_v6 }
  0x9a   : >> { %v386_v27 = vmul.f32 %v874_v19, %v385_v7  ;;  %v395_v28 = vmul.f32 %v875_v20, %v394_v8  ;;  %v398_v29 = vmul.f32 %v875_v20, %v397_v9  ;;  %v407_v31 = vmul.f32 %v875_v20, %v406_v10 }
  0x9b   : >> { %v375_v30 = vadd.f32 %v374_v25, %v353_v22  ;;  %v416_v32 = vmul.f32 %v876_v21, %v415_v11  ;;  %v419_v33 = vmul.f32 %v876_v21, %v418_v12  ;;  %v378_v34 = vadd.f32 %v377_v26, %v356_v23 }
  0x9c   : >> { %v387_v35 = vadd.f32 %v386_v27, %v365_v24  ;;  %v428_v36 = vmul.f32 %v876_v21, %v427_v14  ;;  %v359_v37 = vmul.f32 %v873_v18, %v358_v15  ;;  %v362_v39 = vmul.f32 %v873_v18, %v361_v16 }
  0x9d   : >> { %v396_v38 = vadd.f32 %v395_v28, %v375_v30  ;;  %v367_v40 = vstv %s1624_s21  ;;  %v379_v41 = vstv %s1602_s26  ;;  %v399_v42 = vadd.f32 %v398_v29, %v378_v34 }
  0x9e   : >> { %v408_v43 = vadd.f32 %v407_v31, %v387_v35  ;;  %v368_v44 = vmul.f32 %v873_v18, %v367_v40  ;;  %v380_v45 = vmul.f32 %v874_v19, %v379_v41  ;;  %v382_v47 = vstv %s1610_s7 }
  0x9f   : >> { %v417_v46 = vadd.f32 %v416_v32, %v396_v38  ;;  %v388_v48 = vstv %s1626_s6  ;;  %v400_v49 = vstv %s1604_s15  ;;  %v420_v50 = vadd.f32 %v419_v33, %v399_v42 }
  0xa0   : >> { %v429_v51 = vadd.f32 %v428_v36, %v408_v43  ;;  %v381_v52 = vadd.f32 %v380_v45, %v359_v37  ;;  %v383_v53 = vmul.f32 %v874_v19, %v382_v47  ;;  %v389_v55 = vmul.f32 %v874_v19, %v388_v48 }
  0xa1   : >> { %v433_v54 = vmul.f32 %v1307_v0, %v417_v46  ;;  %v401_v56 = vmul.f32 %v875_v20, %v400_v49  ;;  %v403_v57 = vstv %s1612_s17  ;;  %v434_v58 = vmul.f32 %v1303_v1, %v420_v50 }
  0xa2   : >> { %v384_v59 = vadd.f32 %v383_v53, %v362_v39  ;;  %v404_v60 = vmul.f32 %v875_v20, %v403_v57  ;;  %v409_v61 = vstv %s1628_s18  ;;  %v390_v62 = vadd.f32 %v389_v55, %v368_v44 }
  0xa3   : >> { %v402_v63 = vadd.f32 %v401_v56, %v381_v52  ;;  %v410_v13 = vmul.f32 %v875_v20, %v409_v61  ;;  %v421_v17 = vstv %s1606_s8  ;;  %v435_v18 = vadd.f32 %v434_v58, %v433_v54 }
  0xa4   : >> { %v405_v22 = vadd.f32 %v404_v60, %v384_v59  ;;  %v422_v19 = vmul.f32 %v876_v21, %v421_v17  ;;  %v424_v23 = vstv %s1614_s0  ;;  %v430_v26 = vstv %s1630_s5 }
  0xa5   : >> { %v411_v24 = vadd.f32 %v410_v13, %v390_v62  ;;  %v425_v25 = vmul.f32 %v876_v21, %v424_v23  ;;  %v436_v27 = vadd.f32 %v435_v18, %v429_v51   ;;  %v431_v29 = vmul.f32 %v876_v21, %v430_v26 }
  0xa6   : >> { %v423_v28 = vadd.f32 %v422_v19, %v402_v63  ;;  %v1748_v21 = vmov (%p340_p13), -inf   ;;  %v1752_v35 = vmov (%p340_p13), inf   ;;  %v1754_v36 = vmov (%p340_p13), inf  }
  0xa7   : >> { %v426_v30 = vadd.f32 %v425_v25, %v405_v22  ;;  %442 = vst [vmem:[%s441_s4] sm:$0xff] %v436_v27  ;;  %v432_v31 = vadd.f32 %v431_v29, %v411_v24 }
  0xa8   : >> { %v437_v20 = vmul.f32 %v1307_v0, %v423_v28  ;;  %v2058_v0 = vmov %v436_v27 }
  0xa9   : >> { %v438_v32 = vmul.f32 %v1303_v1, %v426_v30  ;;  %342 = sbr.rel (!%p340_p13) target bundleno = 147 (0x93), region = 148  ;;  %v1750_v0 = vmov (%p340_p13), -inf  }
  0xab   : >> { %v439_v33 = vadd.f32 %v438_v32, %v437_v20 }
  0xad   : >> { %v440_v34 = vadd.f32 %v439_v33, %v432_v31  }
  0xaf   : >> { %444 = vst [vmem:[%s443_s22] sm:$0xff] %v440_v34  ;;  %v2057_v1 = vmov %v440_v34 }
  0xb0 LB: >> { %s1782_s30 = sshll.u32 %s1339_s28, 3  ;;  %s2059_s4 = scalar_lea.vmem [#allocation6], %s1569_s10  ;;  %v1348_v37 = vmov 0.0   ;;  %s1339_s28 = sphi %s1760_s28, %s450_s28   ;;  %v1335_v27 = vphi %v436_v27, %v547_v27   ;;  %v1331_v34 = vphi %v440_v34, %v551_v34   ;;  %v1327_v36 = vphi %v1754_v36, %v2063_v36   ;;  %v1323_v35 = vphi %v1752_v35, %v2062_v35   ;;  %v1319_v0 = vphi %v1750_v0, %v2061_v0   ;;  %v1315_v21 = vphi %v1748_v21, %v2060_v21  }
  0xb1   : >> { %s458_s22 = scalar_lea.vmem %s2059_s4, %s1782_s30 [#allocation6]  ;;  %s552_s4 = scalar_lea.vmem %s1633_s3, %s1782_s30 [#allocation9] }
  0xb2   : >> { %v459_v1 = vld [vmem:[%s458_s22] sm:$0xff]  ;;  %s554_s22 = scalar_lea.vmem %s1636_s27, %s1782_s30 [#allocation10]  ;;  %s450_s28 = sadd.s32 1, %s1339_s28  }
  0xb3   : >> { %vm460_vm4 = vcmp.eq.s32.totalorder %v459_v1, 0  ;;  %vm481_vm5 = vcmp.eq.s32.totalorder %v459_v1, 1  ;;  %vm502_vm6 = vcmp.eq.s32.totalorder %v459_v1, 2  ;;  %vm523_vm7 = vcmp.eq.s32.totalorder %v459_v1, 3  ;;  %p447_p5 = scmp.ge.s32.totalorder %s450_s28, 64  }
  0xb4   : >> { %v878_v38 = vsel %vm460_vm4, 1.0, %v1348_v37  ;;  %v879_v39 = vsel %vm481_vm5, 1.0, %v1348_v37  ;;  %v880_v42 = vsel %vm502_vm6, 1.0, %v1348_v37  ;;  %v881_v43 = vsel %vm523_vm7, 1.0, %v1348_v37  ;;  %s2064_s30 = sld [smem:[#allocation29_spill]] (%p447_p5)  ;;  %s2067_s2 = sld [smem:[#allocation34_spill]] (%p447_p5) }
  0xb5   : >> { %v464_v44 = vmul.f32 %v878_v38, %v352_v2  ;;  %v467_v45 = vmul.f32 %v878_v38, %v355_v3  ;;  %v476_v46 = vmul.f32 %v878_v38, %v364_v4  ;;  %v485_v50 = vmul.f32 %v879_v39, %v373_v5  ;;  %s602_s18 = sshll.u32 (%p447_p5), %s1636_s27, 4  ;;  %s1349_s21 = smov (%p447_p5), [#allocation10]   ;;  %s1874_s18 = int_to_ptr.vmem [resolvable:$true] %s602_s18 }
  0xb6   : >> { %v488_v51 = vmul.f32 %v879_v39, %v376_v6  ;;  %v497_v52 = vmul.f32 %v879_v39, %v385_v7  ;;  %v506_v53 = vmul.f32 %v880_v42, %v394_v8  ;;  %v509_v54 = vmul.f32 %v880_v42, %v397_v9  ;;  %s1125_s20 = scalar_lea.vmem (%p447_p5), %s1874_s18, 8192  ;;  %s1129_s24 = sshll.u32 (%p447_p5), %s1349_s21, 4  ;;  %s1130_s24 = int_to_ptr.vmem [resolvable:$false] %s1129_s24 }
  0xb7   : >> { %v486_v55 = vadd.f32 %v485_v50, %v464_v44  ;;  %v518_v56 = vmul.f32 %v880_v42, %v406_v10  ;;  %v527_v58 = vmul.f32 %v881_v43, %v415_v11  ;;  %v530_v59 = vmul.f32 %v881_v43, %v418_v12  ;;  %p1126_p0 = scmp.ne.s32.totalorder (%p447_p5), %s1874_s18, %s1125_s20  ;;  %s1131_s6 = scalar_lea.vmem (%p447_p5), %s1130_s24, 16384 }
  0xb8   : >> { %v489_v60 = vadd.f32 %v488_v51, %v467_v45  ;;  %v498_v62 = vadd.f32 %v497_v52, %v476_v46  ;;  %v539_v63 = vmul.f32 %v881_v43, %v427_v14  ;;  %v470_v13 = vmul.f32 %v878_v38, %v358_v15  ;;  %p1132_p6 = scmp.lt.s32.totalorder (%p447_p5), %s1874_s18, %s1130_s24  ;;  %p1133_p11 = scmp.lt.s32.totalorder (%p447_p5), %s1131_s6, %s1125_s20 }
  0xb9   : >> { %v507_v18 = vadd.f32 %v506_v53, %v486_v55  ;;  %v473_v22 = vmul.f32 %v878_v38, %v361_v16  ;;  %v479_v19 = vmul.f32 %v878_v38, %v367_v40  ;;  %v491_v24 = vmul.f32 %v879_v39, %v379_v41 }
  0xba   : >> { %v510_v25 = vadd.f32 %v509_v54, %v489_v60  ;;  %v519_v28 = vadd.f32 %v518_v56, %v498_v62  ;;  %v494_v29 = vmul.f32 %v879_v39, %v382_v47  ;;  %v500_v30 = vmul.f32 %v879_v39, %v388_v48  ;;  %p1134_p7 = por (%p447_p5), %p1133_p11, %p1132_p6 }
  0xbb   : >> { %v528_v20 = vadd.f32 %v527_v58, %v507_v18  ;;  %v492_v31 = vadd.f32 %v491_v24, %v470_v13  ;;  %v512_v32 = vmul.f32 %v880_v42, %v400_v49  ;;  %v515_v33 = vmul.f32 %v880_v42, %v403_v57 }
  0xbc   : >> { %v531_v1 = vadd.f32 %v530_v59, %v510_v25  ;;  %v540_v37 = vadd.f32 %v539_v63, %v519_v28  ;;  %v495_v38 = vadd.f32 %v494_v29, %v473_v22  ;;  %v501_v44 = vadd.f32 %v500_v30, %v479_v19 }
  0xbd   : >> { %v544_v45 = vmul.f32 %v1335_v27, %v528_v20  ;;  %v513_v46 = vadd.f32 %v512_v32, %v492_v31  ;;  %v521_v50 = vmul.f32 %v880_v42, %v409_v61  ;;  %v533_v51 = vmul.f32 %v881_v43, %v421_v17 }
  0xbe   : >> { %v545_v39 = vmul.f32 %v1331_v34, %v531_v1  ;;  %v516_v52 = vadd.f32 %v515_v33, %v495_v38  ;;  %v536_v53 = vmul.f32 %v881_v43, %v424_v23  ;;  %v542_v54 = vmul.f32 %v881_v43, %v430_v26 }
  0xbf   : >> { %v522_v55 = vadd.f32 %v521_v50, %v501_v44  ;;  %v534_v56 = vadd.f32 %v533_v51, %v513_v46 }
  0xc0   : >> { %v546_v58 = vadd.f32 %v545_v39, %v544_v45  ;;  %v537_v59 = vadd.f32 %v536_v53, %v516_v52 }
  0xc1   : >> { %v548_v60 = vmul.f32 %v1335_v27, %v534_v56  ;;  %v543_v62 = vadd.f32 %v542_v54, %v522_v55 }
  0xc2   : >> { %v547_v27 = vadd.f32 %v546_v58, %v540_v37   ;;  %v549_v42 = vmul.f32 %v1331_v34, %v537_v59 }
  0xc4   : >> { %553 = vst [vmem:[%s552_s4] sm:$0xff] %v547_v27  ;;  %v556_v63 = vmin.f32 %v1327_v36, %v547_v27   ;;  %v558_v13 = vmax.f32 %v1319_v0, %v547_v27   ;;  %v550_v18 = vadd.f32 %v549_v42, %v548_v60  ;;  %449 = sbr.rel (!%p447_p5) target bundleno = 176 (0xb0), region = 159  ;;  %s2065_s4 = sld [smem:[#allocation22_spill]] (%p447_p5) }
  0xc6   : >> { %v551_v34 = vadd.f32 %v550_v18, %v543_v62   ;;  %v2061_v0 = vmov %v558_v13  ;;  %v2063_v36 = vmov %v556_v63  ;;  %560 = vst [vmem:[%s2064_s30] sm:$0xff] (%p447_p5), %v556_v63  ;;  %562 = vst [vmem:[%s2064_s30 + $0x10] sm:$0xff] (%p447_p5), %v558_v13 }
  0xc8   : >> { %555 = vst [vmem:[%s554_s22] sm:$0xff] %v551_v34  ;;  %v557_v43 = vmin.f32 %v1323_v35, %v551_v34   ;;  %v559_v22 = vmax.f32 %v1315_v21, %v551_v34   ;;  %s2066_s22 = sld [smem:[#allocation25_spill]] (%p447_p5) }
  0xca   : >> { %v2060_v21 = vmov %v559_v22  ;;  %v2062_v35 = vmov %v557_v43  ;;  %561 = vst [vmem:[%s2064_s30 + $0x8] sm:$0xff] (%p447_p5), %v557_v43  ;;  %563 = vst [vmem:[%s2064_s30 + $0x18] sm:$0xff] (%p447_p5), %v559_v22  ;;  %s569_s3 = sand.u32 (%p447_p5), 1, %s2065_s4   ;;  %s885_s28 = sshll.u32 (%p447_p5), %s2065_s4, 7 }
  0xcb   : > { %s1871_s5 = scalar_lea.hbm %s2067_s2, %s885_s28  ;;  %s1876_s19 = scalar_lea.sflag [#allocation11], %s569_s3 }
  0xce   : > { %p2068_p8 = scmp.ne.s32.totalorder %s2066_s22, 0 }
  0xd0   : > { %p1127_p9 = pnand %p1126_p0, %p2068_p8 }
  0xd2   : > { %p1128_p10 = pneg %p1127_p9 }
  0xd4   : > { %p1135_p2 = pnand %p1134_p7, %p1128_p10 }
  0xd6   : > { %1138 = shalt.err (!%p1135_p2)
}
  0xd7   : > { %s1139_s3 = scalar_lea.hbm %s1871_s5, 8192  ;;  %s1143_s12 = scalar_lea.hbm %s2067_s2, 16384 }
  0xd8   : > { %p1140_p4 = scmp.ne.s32.totalorder %s1871_s5, %s1139_s3  ;;  %p1144_p3 = scmp.lt.u32.totalorder %s1871_s5, %s2067_s2 }
  0xd9   : > { %p1145_p13 = scmp.lt.u32.totalorder %s1143_s12, %s1139_s3  ;;  %p1147_p0 = scmp.lt.u32.totalorder %s1139_s3, %s1871_s5 }
  0xda   : > { %p1141_p1 = pnand %p1140_p4, %p2068_p8 }
  0xdb   : > { %p1146_p5 = por %p1145_p13, %p1144_p3 }
  0xdc   : > { %p1142_p12 = pneg %p1141_p1 }
  0xdd   : > { %p1148_p9 = por %p1147_p0, %p1146_p5 }
  0xdf   : > { %p1149_p10 = pnand %p1148_p9, %p1142_p12 }
  0xe1   : > { %1152 = shalt.err (!%p1149_p10)
}
  0xe2   : > { %s1350_s9 = smov 128   ;;  %s2069_s23 = sld [smem:[#allocation28_spill]] }
  0xe3   : > { %s2070_s11 = sld [smem:[#allocation27_spill]]  ;;  %s1351_s13 = smov 256  }
  0xe4   : > { %s1352_s29 = smov 8   ;;  %s2071_s15 = sld [smem:[#allocation33_spill]] }
  0xe5   : > { %901 = dma.vmem_to_hbm [thread:$0]  (%p2068_p8), %s1874_s18, 8192, %s1871_s5, %s1876_s19, %s1350_s9, %s1351_s13, %s1352_s29  }
  0xe6   : > { %s891_s17 = sshll.u32 %s2065_s4, 9  ;;  %s1353_s5 = smov [#allocation9]  }
  0xe7   : > { %s1157_s18 = sshll.u32 %s1353_s5, 4  ;;  %s1158_s18 = int_to_ptr.vmem [resolvable:$false] %s1157_s18 }
  0xe8   : > { %s587_s7 = sshll.u32 %s2069_s23, 4  ;;  %s1159_s20 = scalar_lea.vmem %s1158_s18, 16384  ;;  %s1911_s7 = int_to_ptr.vmem [resolvable:$true] %s587_s7 }
  0xe9   : > { %s565_s0 = scalar_lea.sflag [#allocation4], %s2070_s11  ;;  %s1153_s1 = scalar_lea.vmem %s1911_s7, 8192 }
  0xea   : > { %s1908_s8 = scalar_lea.hbm %s2071_s15, %s885_s28  ;;  %p1154_p6 = scmp.ne.s32.totalorder %s1911_s7, %s1153_s1 }
  0xeb   : > { %p1160_p2 = scmp.lt.s32.totalorder %s1911_s7, %s1158_s18  ;;  %p1161_p4 = scmp.lt.s32.totalorder %s1159_s20, %s1153_s1 }
  0xec   : > { %p1155_p11 = pnand %p1154_p6, %p2068_p8 }
  0xed   : > { %p1162_p1 = por %p1161_p4, %p1160_p2 }
  0xee   : > { %p1156_p7 = pneg %p1155_p11 }
  0xf0   : > { %p1163_p12 = pnand %p1162_p1, %p1156_p7 }
  0xf2   : > { %1166 = shalt.err (!%p1163_p12)
}
  0xf3   : > { %s1167_s28 = scalar_lea.hbm %s1908_s8, 8192  ;;  %s1171_s6 = scalar_lea.hbm %s2071_s15, 16384 }
  0xf4   : > { %p1168_p3 = scmp.ne.s32.totalorder %s1908_s8, %s1167_s28  ;;  %p1172_p0 = scmp.lt.u32.totalorder %s1908_s8, %s2071_s15 }
  0xf5   : > { %p1173_p9 = scmp.lt.u32.totalorder %s1171_s6, %s1167_s28  ;;  %p1175_p6 = scmp.lt.u32.totalorder %s1167_s28, %s1908_s8 }
  0xf6   : > { %p1169_p13 = pnand %p1168_p3, %p2068_p8 }
  0xf7   : > { %p1174_p10 = por %p1173_p9, %p1172_p0 }
  0xf8   : > { %p1170_p5 = pneg %p1169_p13 }
  0xf9   : > { %p1176_p11 = por %p1175_p6, %p1174_p10 }
  0xfb   : > { %p1177_p7 = pnand %p1176_p11, %p1170_p5 }
  0xfd   : > { %1180 = shalt.err (!%p1177_p7)
}
  0xfe   : > { %900 = dma.vmem_to_hbm [thread:$0]  (%p2068_p8), %s1911_s7, 8192, %s1908_s8, %s565_s0, %s1350_s9, %s1351_s13, %s1352_s29  }
  0xff   : > { %s2072_s25 = sld [smem:[#allocation35_spill]]  ;;  %s618_s23 = sshll.u32 %s2064_s30, 4  ;;  %s1949_s23 = int_to_ptr.vmem [resolvable:$true] %s618_s23 }
 0x100   : > { %s1181_s14 = scalar_lea.vmem %s1949_s23, 512  ;;  %s1354_s11 = smov [#allocation12]  }
 0x101   : > { %p1182_p2 = scmp.ne.s32.totalorder %s1949_s23, %s1181_s14  ;;  %s1185_s26 = sshll.u32 %s1354_s11, 4  ;;  %s1186_s26 = int_to_ptr.vmem [resolvable:$false] %s1185_s26 }
 0x102   : > { %s1187_s4 = scalar_lea.vmem %s1186_s26, 1024  ;;  %p1188_p12 = scmp.lt.s32.totalorder %s1949_s23, %s1186_s26 }
 0x103   : > { %p1183_p4 = pnand %p1182_p2, %p2068_p8  ;;  %p1189_p3 = scmp.lt.s32.totalorder %s1187_s4, %s1181_s14 }
 0x105   : > { %s1946_s16 = scalar_lea.hbm %s2072_s25, %s891_s17  ;;  %p1184_p1 = pneg %p1183_p4 }
 0x106   : > { %p1190_p13 = por %p1189_p3, %p1188_p12 }
 0x108   : > { %p1191_p5 = pnand %p1190_p13, %p1184_p1 }
 0x10a   : > { %1194 = shalt.err (!%p1191_p5)
}
 0x10b   : > { %s1195_s30 = scalar_lea.hbm %s1946_s16, 512  ;;  %s1199_s7 = scalar_lea.hbm %s2072_s25, 1024 }
 0x10c   : > { %p1196_p0 = scmp.ne.s32.totalorder %s1946_s16, %s1195_s30  ;;  %p1200_p6 = scmp.lt.u32.totalorder %s1946_s16, %s2072_s25 }
 0x10d   : > { %p1201_p11 = scmp.lt.u32.totalorder %s1199_s7, %s1195_s30  ;;  %p1203_p2 = scmp.lt.u32.totalorder %s1195_s30, %s1946_s16 }
 0x10e   : > { %p1197_p9 = pnand %p1196_p0, %p2068_p8 }
 0x10f   : > { %p1202_p7 = por %p1201_p11, %p1200_p6 }
 0x110   : > { %p1198_p10 = pneg %p1197_p9 }
 0x111   : > { %p1204_p4 = por %p1203_p2, %p1202_p7 }
 0x113   : > { %p1205_p1 = pnand %p1204_p4, %p1198_p10 }
 0x115   : > { %1208 = shalt.err (!%p1205_p1)
}
 0x116   : > { %902 = dma.vmem_to_hbm [thread:$0]  (%p2068_p8), %s1949_s23, 512, %s1946_s16, %s1876_s19, %s1350_s9, %s1350_s9, %s1352_s29  }
 0x117 PF: > { %s2073_s1 = sld [smem:[#allocation18_spill]]  ;;  %s2074_s5 = sld [smem:[#allocation26_spill]] }
 0x118   : > { %s2075_s18 = sld [smem:[#allocation21_spill]] }
 0x11d   : > { %s633_s20 = sand.u32 1, %s2073_s1   ;;  %p2076_p12 = scmp.ne.s32.totalorder %s2074_s5, 0 }
 0x11e   : > { %p2077_p3 = scmp.ge.s32.totalorder %s2075_s18, 2  ;;  %s634_s28 = scalar_lea.sflag [#allocation4], %s633_s20 }
 0x120   : > { %p918_p13 = pnand %p2077_p3, %p2076_p12 }
 0x122   : > { %1278 = dma.done.wait (!%p918_p13), %s634_s28, 8192  }
 0x123   : > { %1280 = vsyncadd (!%p918_p13), %s634_s28, 4294959104  ;;  %s2078_s22 = sadd.s32 4294967294, %s2075_s18  }
 0x124   : > { %s642_s21 = sand.u32 1, %s2078_s22  }
 0x125   : > { %s643_s24 = scalar_lea.sflag [#allocation11], %s642_s21 }
 0x126   : > { %1282 = dma.done.wait (!%p918_p13), %s643_s24, 8704  }
 0x127   : > { %1284 = vsyncadd (!%p918_p13), %s643_s24, 4294958592  ;;  %s2079_s21 = sld [smem:[#allocation23_spill]]  ;;  %s2080_s18 = sld [smem:[#allocation19_spill]] }
 0x128   : > { %s2081_s19 = sld [smem:[#allocation20_spill]]  ;;  %s2082_s20 = sld [smem:[#allocation24_spill]] }
 0x12d   : > { %p26_p8 = scmp.ge.s32.totalorder %s2079_s21, 4  }
 0x12f   :  { %28 = sbr.rel (!%p26_p8) target bundleno = 17 (0x11), region = 170 }
 0x136   :  { %657 = vsyncpa [#allocation3], 1 }
 0x137   :  { %659 = vsyncpa [#allocation3 + $0x1], 1 }
 0x138   :  { %660 = vsyncpa [#allocation8], 1 }
 0x139   :  { %662 = vsyncpa [#allocation8 + $0x1], 1 }
 0x13a   :  { %663 = vsyncpa [#allocation4], 1 }
 0x13b   :  { %665 = vsyncpa [#allocation4 + $0x1], 1 }
 0x13c   :  { %666 = vsyncpa [#allocation11], 1 }
 0x13d   :  { %668 = vsyncpa [#allocation11 + $0x1], 1 }
 0x13e   :  { %669 = vsyncpa [#allocation5], 1 }
 0x13f   :  { %671 = vsyncpa [#allocation5 + $0x1], 1 }

</bundles_post_ra>
